<compile_context>
chip_gen: v6e
topology: v6e:2x2x1
jax: 0.10.0
libtpu: 0.0.40
codegen_flags: <defaults>
</compile_context>

<pallas_src>
import functools

import jax
import jax.numpy as jnp
from jax import lax
from jax.experimental import pallas as pl
from jax.experimental.pallas import tpu as pltpu


def _head_kernel(h_ref, wd_ref, bd_ref, wo_ref, bo_ref, logits_ref, acc_ref,
                 *, inv_t, tail_len):
    t = pl.program_id(1)
    nt = pl.num_programs(1)

    @pl.when(t == 0)
    def _():
        acc_ref[...] = jnp.zeros_like(acc_ref)

    if tail_len == 0:
        # T divides the time tile: every block is full -> plain streamed sum.
        acc_ref[...] += jnp.sum(h_ref[...].astype(jnp.float32), axis=1)
    else:
        # All blocks except the last are full.
        @pl.when(t < nt - 1)
        def _():
            acc_ref[...] += jnp.sum(h_ref[...].astype(jnp.float32), axis=1)

        # Partial last block: rows >= tail_len are out-of-bounds padding; mask
        # them so the mean matches torch.mean over the true T.
        @pl.when(t == nt - 1)
        def _():
            h = h_ref[...].astype(jnp.float32)
            row = lax.broadcasted_iota(jnp.int32, h.shape, 1)
            acc_ref[...] += jnp.sum(jnp.where(row < tail_len, h, 0.0), axis=1)

    @pl.when(t == nt - 1)
    def _():
        pooled = acc_ref[...] * inv_t                                    # mean over T
        x = jnp.tanh(jnp.dot(pooled, wd_ref[...],
                             preferred_element_type=jnp.float32) + bd_ref[...])
        logits = (jnp.dot(x, wo_ref[...],
                          preferred_element_type=jnp.float32) + bo_ref[...])
        logits_ref[:, 0, :] = logits.astype(logits_ref.dtype)


def _largest_divisor(n, cap):
    """Largest divisor of `n` that is <= cap (quantum 1: leading batch dim)."""
    cap = max(1, min(n, cap))
    for d in range(cap, 0, -1):
        if n % d == 0:
            return d
    return 1


def _vmem_capacity_bytes():
    """Physical VMEM of the attached TPU (64 MiB v7x, 128 MiB v5e/v6e)."""
    try:
        cap = int(getattr(pltpu.get_tpu_info(), "vmem_capacity_bytes", 0))
        if cap > 0:
            return cap
    except Exception:
        pass
    return 64 << 20  # conservative fallback (safe on every generation)


def prepare_head_params(w_dense, b_dense, w_out, b_out):
    """One-time (per checkpoint) layout prep, hoisted out of the per-call path.

    Pads num_labels up to a full 128-lane slab so the kernel's output store is
    lane-dense, and reshapes biases to [1, .] for in-kernel broadcasting.
    """
    H = w_dense.shape[0]
    num_labels = int(w_out.shape[-1])
    nl_pad = max(128, pl.cdiv(num_labels, 128) * 128)
    wo_p = jnp.zeros((H, nl_pad), w_out.dtype).at[:, :num_labels].set(
        w_out.reshape(H, num_labels))
    bo_p = jnp.zeros((1, nl_pad), b_out.dtype).at[:, :num_labels].set(
        b_out.reshape(1, num_labels))
    return {
        "w_dense": w_dense,
        "b_dense": b_dense.reshape(1, H),
        "w_out_padded": wo_p,
        "b_out_padded": bo_p,
        "num_labels": num_labels,
    }


def wav2vec2bert_forward(hidden_states, head_params, *, time_tile=1024, batch_tile=8):
    """Mean-pool over time (merged_strategy 'mean') + ClassificationHead.

    hidden_states: [B, T, H] backbone last_hidden_state, streamed in its native
        dtype (f32 or bf16); accumulation is always f32.  Do NOT pre-cast here
        just to shrink the stream — a standalone cast is an extra HBM pass.
    head_params: dict from prepare_head_params().
    """
    B, T, H = hidden_states.shape
    w_dense = head_params["w_dense"]
    b_dense = head_params["b_dense"]
    wo_p = head_params["w_out_padded"]
    bo_p = head_params["b_out_padded"]
    num_labels = head_params["num_labels"]
    nl_pad = wo_p.shape[1]

    itemsize = jnp.dtype(hidden_states.dtype).itemsize
    quantum = max(8, 32 // itemsize)  # sublane quantum: 8 f32 / 16 bf16 / 32 int8

    # Batch tile: any divisor of B (leading dim, no sublane constraint); keep
    # >= 2 batch grid steps when B >= 2 so both TensorCores stream on v7x.
    tb_cap = max(1, min(batch_tile, B // 2)) if B >= 2 else 1
    tb = _largest_divisor(B, tb_cap)

    # Time tile: generation-aware.  Budget ~1/8 of physical VMEM per streamed
    # buffer (double-buffered => 1/4 total), capped at `time_tile`, rounded to
    # the dtype quantum.  A non-divisible T uses a partial, in-kernel-masked
    # last block rather than a wrapper-side zero-pad copy.
    vmem_cap = _vmem_capacity_bytes()
    row_bytes = tb * H * itemsize
    tt = min(time_tile, max(quantum, (vmem_cap // 8) // row_bytes))
    tt = max(quantum, (tt // quantum) * quantum)
    if T <= tt:
        tt = T  # single full-extent time block (always layout-legal)
    num_t = pl.cdiv(T, tt)
    tail_len = T % tt  # 0 => every time block is full

    kernel = functools.partial(_head_kernel, inv_t=1.0 / T, tail_len=tail_len)

    # VMEM budget: double-buffered h tile + (conservatively double-buffered)
    # weights + resident output/accumulator + margin, clamped to physical VMEM.
    weight_bytes = sum(int(a.size) * jnp.dtype(a.dtype).itemsize
                       for a in (w_dense, b_dense, wo_p, bo_p))
    h_tile_bytes = tb * tt * H * itemsize
    vmem_bytes = int(2 * h_tile_bytes + 2 * weight_bytes
                     + 2 * tb * nl_pad * 4 + tb * H * 4 + (4 << 20))
    vmem_bytes = min(vmem_bytes, vmem_cap)

    def _build(weight_mode):
        def _wspec(shape):
            kw = {"pipeline_mode": weight_mode} if weight_mode is not None else {}
            return pl.BlockSpec(shape, lambda b, t: (0,) * len(shape), **kw)

        grid_spec = pltpu.PrefetchScalarGridSpec(
            num_scalar_prefetch=0,
            grid=(B // tb, num_t),
            in_specs=[
                # Streamed activation tile (default 2-deep pipelining).
                pl.BlockSpec((tb, tt, H), lambda b, t: (b, t, 0)),
                # VMEM-resident head weights (constant index maps).
                _wspec((H, H)),
                _wspec((1, H)),
                _wspec((H, nl_pad)),
                _wspec((1, nl_pad)),
            ],
            # Same block index across the T axis -> logits stay VMEM-resident,
            # written back once per batch tile (after the finalize step).  The
            # dummy middle axis keeps the block's last two dims (1, nl_pad)
            # layout-legal for any batch tile size.
            out_specs=pl.BlockSpec((tb, 1, nl_pad), lambda b, t: (b, 0, 0)),
            scratch_shapes=[pltpu.VMEM((tb, H), jnp.float32)],  # f32 time-sum acc
        )
        return pl.pallas_call(
            kernel,
            out_shape=jax.ShapeDtypeStruct((B, 1, nl_pad), jnp.float32),
            grid_spec=grid_spec,
            compiler_params=pltpu.CompilerParams(
                # Batch axis parallel (shards across v7x's 2 TCs); T is the
                # streamed reduction axis.
                dimension_semantics=("parallel", "arbitrary"),
                vmem_limit_bytes=vmem_bytes,
            ),
        )

    args = (hidden_states, w_dense, b_dense, wo_p, bo_p)
    try:
        # Constant weights only need one buffer; frees ~half their VMEM footprint.
        logits_pad = _build(pl.Buffered(1))(*args)
    except Exception:
        # Fallback for JAX versions without single-buffer pipeline_mode support.
        logits_pad = _build(None)(*args)

    return logits_pad[:, 0, :num_labels]


def _reference(hidden_states, w_dense, b_dense, w_out, b_out):
    pooled = jnp.mean(hidden_states.astype(jnp.float32), axis=1)
    x = jnp.tanh(pooled @ w_dense + b_dense)
    return x @ w_out + b_out


if __name__ == "__main__":
    key = jax.random.PRNGKey(0)

    cases = [
        # (name, B, T, H, num_labels, stream dtype, time_tile cap, tolerance)
        ("base_f32",     2,   8, 32, 2, jnp.float32, 1024, 1e-5),
        ("partial_tail", 4, 200, 32, 2, jnp.float32,   64, 1e-4),  # masked tail + 2 batch steps
        ("bf16_stream",  2,  48, 32, 2, jnp.bfloat16, 1024, 1e-4),
    ]

    for idx, (name, B, T, H, NUM_LABELS, dt, ttile, tol) in enumerate(cases):
        k = jax.random.fold_in(key, idx)
        k_h, k_wd, k_bd, k_wo, k_bo = jax.random.split(k, 5)

        # Synthetic backbone output (last_hidden_state), streamed in its dtype.
        hidden_states = jax.random.normal(k_h, (B, T, H), dtype=jnp.float32).astype(dt)

        # ClassificationHead params, torch.nn.Linear-style uniform(-1/sqrt(in), 1/sqrt(in)),
        # stored as [in, out] (transposed relative to torch).
        lim = 1.0 / (H ** 0.5)
        w_dense = jax.random.uniform(k_wd, (H, H), jnp.float32, -lim, lim)
        b_dense = jax.random.uniform(k_bd, (1, H), jnp.float32, -lim, lim)
        w_out = jax.random.uniform(k_wo, (H, NUM_LABELS), jnp.float32, -lim, lim)
        b_out = jax.random.uniform(k_bo, (1, NUM_LABELS), jnp.float32, -lim, lim)

        params = prepare_head_params(w_dense, b_dense, w_out, b_out)  # one-time prep
        logits = wav2vec2bert_forward(hidden_states, params, time_tile=ttile)
        jax.block_until_ready(logits)

        ref = _reference(hidden_states, w_dense, b_dense, w_out, b_out)
        assert logits.shape == (B, NUM_LABELS), (name, logits.shape)
        assert jnp.allclose(logits, ref, atol=tol, rtol=tol), (
            name, float(jnp.max(jnp.abs(logits - ref))))

    print("KERNEL_OK")
</pallas_src>

<mosaic_0001>
module attributes {stable_mosaic.version = 11 : i64} {
  func.func @_head_kernel(%arg0: i32, %arg1: i32, %arg2: memref<1x8x32xf32, #tpu.memory_space<vmem>>, %arg3: memref<32x32xf32, #tpu.memory_space<vmem>>, %arg4: memref<1x32xf32, #tpu.memory_space<vmem>>, %arg5: memref<32x128xf32, #tpu.memory_space<vmem>>, %arg6: memref<1x128xf32, #tpu.memory_space<vmem>>, %arg7: memref<1x1x128xf32, #tpu.memory_space<vmem>>, %arg8: memref<1x32xf32, #tpu.memory_space<vmem>>) attributes {dimension_semantics = [#tpu.dimension_semantics<parallel>, #tpu.dimension_semantics<arbitrary>], iteration_bounds = array<i64: 2, 1>, scalar_prefetch = 0 : i64, scratch_operands = 1 : i64, tpu.core_type = #tpu.core_type<tc>, window_params = [{transform_indices = @transform_0, window_bounds = array<i64: 1, 8, 32>}, {pipeline_mode = #tpu.pipeline_mode<synchronous>, transform_indices = @transform_1, window_bounds = array<i64: 32, 32>}, {pipeline_mode = #tpu.pipeline_mode<synchronous>, transform_indices = @transform_2, window_bounds = array<i64: 1, 32>}, {pipeline_mode = #tpu.pipeline_mode<synchronous>, transform_indices = @transform_3, window_bounds = array<i64: 32, 128>}, {pipeline_mode = #tpu.pipeline_mode<synchronous>, transform_indices = @transform_4, window_bounds = array<i64: 1, 128>}, {transform_indices = @transform_5, window_bounds = array<i64: 1, 1, 128>}]} {
    %c0_i32 = arith.constant 0 : i32
    %0 = arith.cmpi eq, %arg1, %c0_i32 : i32
    %1 = arith.extui %0 : i1 to i32
    %c0_i32_0 = arith.constant 0 : i32
    %2 = arith.cmpi ne, %1, %c0_i32_0 : i32
    scf.if %2 {
      %cst_9 = arith.constant 0.000000e+00 : f32
      %11 = vector.broadcast %cst_9 : f32 to vector<1x32xf32>
      %c0_10 = arith.constant 0 : index
      %c0_11 = arith.constant 0 : index
      %12 = vector.load %arg8[%c0_10, %c0_11] : memref<1x32xf32, #tpu.memory_space<vmem>>, vector<1x32xf32>
      tpu.vector_store %arg8[%c0_10, %c0_11], %11 {strides = array<i32>} : memref<1x32xf32, #tpu.memory_space<vmem>>, vector<1x32xf32>,
    } else {
    }
    %c0 = arith.constant 0 : index
    %c0_1 = arith.constant 0 : index
    %3 = vector.load %arg8[%c0, %c0_1] : memref<1x32xf32, #tpu.memory_space<vmem>>, vector<1x32xf32>
    %c0_2 = arith.constant 0 : index
    %c0_3 = arith.constant 0 : index
    %c0_4 = arith.constant 0 : index
    %4 = vector.load %arg2[%c0_2, %c0_3, %c0_4] : memref<1x8x32xf32, #tpu.memory_space<vmem>>, vector<1x8x32xf32>
    %cst = arith.constant dense<0.000000e+00> : vector<1x32xf32>
    %5 = vector.multi_reduction <add>, %4, %cst [1] : vector<1x8x32xf32> to vector<1x32xf32>
    %6 = arith.addf %3, %5 : vector<1x32xf32>
    %c0_5 = arith.constant 0 : index
    %c0_6 = arith.constant 0 : index
    %7 = vector.load %arg8[%c0_5, %c0_6] : memref<1x32xf32, #tpu.memory_space<vmem>>, vector<1x32xf32>
    tpu.vector_store %arg8[%c0_5, %c0_6], %6 {strides = array<i32>} : memref<1x32xf32, #tpu.memory_space<vmem>>, vector<1x32xf32>,
    %c0_i32_7 = arith.constant 0 : i32
    %8 = arith.cmpi eq, %arg1, %c0_i32_7 : i32
    %9 = arith.extui %8 : i1 to i32
    %c0_i32_8 = arith.constant 0 : i32
    %10 = arith.cmpi ne, %9, %c0_i32_8 : i32
    scf.if %10 {
      %c0_9 = arith.constant 0 : index
      %c0_10 = arith.constant 0 : index
      %11 = vector.load %arg8[%c0_9, %c0_10] : memref<1x32xf32, #tpu.memory_space<vmem>>, vector<1x32xf32>
      %cst_11 = arith.constant 1.250000e-01 : f32
      %12 = vector.broadcast %cst_11 : f32 to vector<1x32xf32>
      %13 = arith.mulf %11, %12 : vector<1x32xf32>
      %c0_12 = arith.constant 0 : index
      %c0_13 = arith.constant 0 : index
      %14 = vector.load %arg3[%c0_12, %c0_13] : memref<32x32xf32, #tpu.memory_space<vmem>>, vector<32x32xf32>
      %cst_14 = arith.constant dense<0.000000e+00> : vector<1x32xf32>
      %15 = tpu.matmul %13, %14, %cst_14 {dimension_numbers = #tpu.dot_dimension_numbers<[1], [0], [0], [1], [0, 0, 1, 1], [], []>} : vector<1x32xf32>, vector<32x32xf32>, vector<1x32xf32> -> vector<1x32xf32>
      %c0_15 = arith.constant 0 : index
      %c0_16 = arith.constant 0 : index
      %16 = vector.load %arg4[%c0_15, %c0_16] : memref<1x32xf32, #tpu.memory_space<vmem>>, vector<1x32xf32>
      %17 = arith.addf %15, %16 : vector<1x32xf32>
      %18 = math.tanh %17 : vector<1x32xf32>
      %c0_17 = arith.constant 0 : index
      %c0_18 = arith.constant 0 : index
      %19 = vector.load %arg5[%c0_17, %c0_18] : memref<32x128xf32, #tpu.memory_space<vmem>>, vector<32x128xf32>
      %cst_19 = arith.constant dense<0.000000e+00> : vector<1x128xf32>
      %20 = tpu.matmul %18, %19, %cst_19 {dimension_numbers = #tpu.dot_dimension_numbers<[1], [0], [0], [1], [0, 0, 1, 1], [], []>} : vector<1x32xf32>, vector<32x128xf32>, vector<1x128xf32> -> vector<1x128xf32>
      %c0_20 = arith.constant 0 : index
      %c0_21 = arith.constant 0 : index
      %21 = vector.load %arg6[%c0_20, %c0_21] : memref<1x128xf32, #tpu.memory_space<vmem>>, vector<1x128xf32>
      %22 = arith.addf %20, %21 : vector<1x128xf32>
      %c0_22 = arith.constant 0 : index
      %c0_23 = arith.constant 0 : index
      %c0_24 = arith.constant 0 : index
      %23 = vector.load %arg7[%c0_22, %c0_23, %c0_24] : memref<1x1x128xf32, #tpu.memory_space<vmem>>, vector<1x1x128xf32>
      %24 = vector.shape_cast %23 : vector<1x1x128xf32> to vector<1x128xf32>
      %25 = vector.shape_cast %22 : vector<1x128xf32> to vector<1x1x128xf32>
      tpu.vector_store %arg7[%c0_22, %c0_23, %c0_24], %25 {strides = array<i32>} : memref<1x1x128xf32, #tpu.memory_space<vmem>>, vector<1x1x128xf32>,
    } else {
    }
    return
  }
  func.func @transform_0(%arg0: i32, %arg1: i32) -> (i32, i32, i32) {
    %c0_i32 = arith.constant 0 : i32
    %c0_i32_0 = arith.constant 0 : i32
    return %arg0, %arg1, %c0_i32 : i32, i32, i32
  }
  func.func @transform_1(%arg0: i32, %arg1: i32) -> (i32, i32) {
    %c0_i32 = arith.constant 0 : i32
    %c0_i32_0 = arith.constant 0 : i32
    %c0_i32_1 = arith.constant 0 : i32
    return %c0_i32, %c0_i32_0 : i32, i32
  }
  func.func @transform_2(%arg0: i32, %arg1: i32) -> (i32, i32) {
    %c0_i32 = arith.constant 0 : i32
    %c0_i32_0 = arith.constant 0 : i32
    %c0_i32_1 = arith.constant 0 : i32
    return %c0_i32, %c0_i32_0 : i32, i32
  }
  func.func @transform_3(%arg0: i32, %arg1: i32) -> (i32, i32) {
    %c0_i32 = arith.constant 0 : i32
    %c0_i32_0 = arith.constant 0 : i32
    %c0_i32_1 = arith.constant 0 : i32
    return %c0_i32, %c0_i32_0 : i32, i32
  }
  func.func @transform_4(%arg0: i32, %arg1: i32) -> (i32, i32) {
    %c0_i32 = arith.constant 0 : i32
    %c0_i32_0 = arith.constant 0 : i32
    %c0_i32_1 = arith.constant 0 : i32
    return %c0_i32, %c0_i32_0 : i32, i32
  }
  func.func @transform_5(%arg0: i32, %arg1: i32) -> (i32, i32, i32) {
    %c0_i32 = arith.constant 0 : i32
    %c0_i32_0 = arith.constant 0 : i32
    %c0_i32_1 = arith.constant 0 : i32
    return %arg0, %c0_i32, %c0_i32_0 : i32, i32, i32
  }
}

module attributes {stable_mosaic.version = 11 : i64} {
  func.func @_head_kernel(%arg0: i32, %arg1: i32, %arg2: memref<1x8x32xf32, #tpu.memory_space<vmem>>, %arg3: memref<32x32xf32, #tpu.memory_space<vmem>>, %arg4: memref<1x32xf32, #tpu.memory_space<vmem>>, %arg5: memref<32x128xf32, #tpu.memory_space<vmem>>, %arg6: memref<1x128xf32, #tpu.memory_space<vmem>>, %arg7: memref<1x1x128xf32, #tpu.memory_space<vmem>>, %arg8: memref<1x32xf32, #tpu.memory_space<vmem>>) attributes {dimension_semantics = [#tpu.dimension_semantics<parallel>, #tpu.dimension_semantics<arbitrary>], iteration_bounds = array<i64: 2, 1>, scalar_prefetch = 0 : i64, scratch_operands = 1 : i64, tpu.core_type = #tpu.core_type<tc>, window_params = [{transform_indices = @transform_0, window_bounds = array<i64: 1, 8, 32>}, {pipeline_mode = #tpu.pipeline_mode<synchronous>, transform_indices = @transform_1, window_bounds = array<i64: 32, 32>}, {pipeline_mode = #tpu.pipeline_mode<synchronous>, transform_indices = @transform_2, window_bounds = array<i64: 1, 32>}, {pipeline_mode = #tpu.pipeline_mode<synchronous>, transform_indices = @transform_3, window_bounds = array<i64: 32, 128>}, {pipeline_mode = #tpu.pipeline_mode<synchronous>, transform_indices = @transform_4, window_bounds = array<i64: 1, 128>}, {transform_indices = @transform_5, window_bounds = array<i64: 1, 1, 128>}]} {
    %c0_i32 = arith.constant 0 : i32
    %0 = arith.cmpi eq, %arg1, %c0_i32 : i32
    %1 = arith.extui %0 : i1 to i32
    %c0_i32_0 = arith.constant 0 : i32
    %2 = arith.cmpi ne, %1, %c0_i32_0 : i32
    scf.if %2 {
      %cst_9 = arith.constant 0.000000e+00 : f32
      %11 = vector.broadcast %cst_9 : f32 to vector<1x32xf32>
      %c0_10 = arith.constant 0 : index
      %c0_11 = arith.constant 0 : index
      %12 = vector.load %arg8[%c0_10, %c0_11] : memref<1x32xf32, #tpu.memory_space<vmem>>, vector<1x32xf32>
      tpu.vector_store %arg8[%c0_10, %c0_11], %11 {strides = array<i32>} : memref<1x32xf32, #tpu.memory_space<vmem>>, vector<1x32xf32>,
    } else {
    }
    %c0 = arith.constant 0 : index
    %c0_1 = arith.constant 0 : index
    %3 = vector.load %arg8[%c0, %c0_1] : memref<1x32xf32, #tpu.memory_space<vmem>>, vector<1x32xf32>
    %c0_2 = arith.constant 0 : index
    %c0_3 = arith.constant 0 : index
    %c0_4 = arith.constant 0 : index
    %4 = vector.load %arg2[%c0_2, %c0_3, %c0_4] : memref<1x8x32xf32, #tpu.memory_space<vmem>>, vector<1x8x32xf32>
    %cst = arith.constant dense<0.000000e+00> : vector<1x32xf32>
    %5 = vector.multi_reduction <add>, %4, %cst [1] : vector<1x8x32xf32> to vector<1x32xf32>
    %6 = arith.addf %3, %5 : vector<1x32xf32>
    %c0_5 = arith.constant 0 : index
    %c0_6 = arith.constant 0 : index
    %7 = vector.load %arg8[%c0_5, %c0_6] : memref<1x32xf32, #tpu.memory_space<vmem>>, vector<1x32xf32>
    tpu.vector_store %arg8[%c0_5, %c0_6], %6 {strides = array<i32>} : memref<1x32xf32, #tpu.memory_space<vmem>>, vector<1x32xf32>,
    %c0_i32_7 = arith.constant 0 : i32
    %8 = arith.cmpi eq, %arg1, %c0_i32_7 : i32
    %9 = arith.extui %8 : i1 to i32
    %c0_i32_8 = arith.constant 0 : i32
    %10 = arith.cmpi ne, %9, %c0_i32_8 : i32
    scf.if %10 {
      %c0_9 = arith.constant 0 : index
      %c0_10 = arith.constant 0 : index
      %11 = vector.load %arg8[%c0_9, %c0_10] : memref<1x32xf32, #tpu.memory_space<vmem>>, vector<1x32xf32>
      %cst_11 = arith.constant 1.250000e-01 : f32
      %12 = vector.broadcast %cst_11 : f32 to vector<1x32xf32>
      %13 = arith.mulf %11, %12 : vector<1x32xf32>
      %c0_12 = arith.constant 0 : index
      %c0_13 = arith.constant 0 : index
      %14 = vector.load %arg3[%c0_12, %c0_13] : memref<32x32xf32, #tpu.memory_space<vmem>>, vector<32x32xf32>
      %cst_14 = arith.constant dense<0.000000e+00> : vector<1x32xf32>
      %15 = tpu.matmul %13, %14, %cst_14 {dimension_numbers = #tpu.dot_dimension_numbers<[1], [0], [0], [1], [0, 0, 1, 1], [], []>} : vector<1x32xf32>, vector<32x32xf32>, vector<1x32xf32> -> vector<1x32xf32>
      %c0_15 = arith.constant 0 : index
      %c0_16 = arith.constant 0 : index
      %16 = vector.load %arg4[%c0_15, %c0_16] : memref<1x32xf32, #tpu.memory_space<vmem>>, vector<1x32xf32>
      %17 = arith.addf %15, %16 : vector<1x32xf32>
      %18 = math.tanh %17 : vector<1x32xf32>
      %c0_17 = arith.constant 0 : index
      %c0_18 = arith.constant 0 : index
      %19 = vector.load %arg5[%c0_17, %c0_18] : memref<32x128xf32, #tpu.memory_space<vmem>>, vector<32x128xf32>
      %cst_19 = arith.constant dense<0.000000e+00> : vector<1x128xf32>
      %20 = tpu.matmul %18, %19, %cst_19 {dimension_numbers = #tpu.dot_dimension_numbers<[1], [0], [0], [1], [0, 0, 1, 1], [], []>} : vector<1x32xf32>, vector<32x128xf32>, vector<1x128xf32> -> vector<1x128xf32>
      %c0_20 = arith.constant 0 : index
      %c0_21 = arith.constant 0 : index
      %21 = vector.load %arg6[%c0_20, %c0_21] : memref<1x128xf32, #tpu.memory_space<vmem>>, vector<1x128xf32>
      %22 = arith.addf %20, %21 : vector<1x128xf32>
      %c0_22 = arith.constant 0 : index
      %c0_23 = arith.constant 0 : index
      %c0_24 = arith.constant 0 : index
      %23 = vector.load %arg7[%c0_22, %c0_23, %c0_24] : memref<1x1x128xf32, #tpu.memory_space<vmem>>, vector<1x1x128xf32>
      %24 = vector.shape_cast %23 : vector<1x1x128xf32> to vector<1x128xf32>
      %25 = vector.shape_cast %22 : vector<1x128xf32> to vector<1x1x128xf32>
      tpu.vector_store %arg7[%c0_22, %c0_23, %c0_24], %25 {strides = array<i32>} : memref<1x1x128xf32, #tpu.memory_space<vmem>>, vector<1x1x128xf32>,
    } else {
    }
    return
  }
  func.func @transform_0(%arg0: i32, %arg1: i32) -> (i32, i32, i32) {
    %c0_i32 = arith.constant 0 : i32
    %c0_i32_0 = arith.constant 0 : i32
    return %arg0, %arg1, %c0_i32 : i32, i32, i32
  }
  func.func @transform_1(%arg0: i32, %arg1: i32) -> (i32, i32) {
    %c0_i32 = arith.constant 0 : i32
    %c0_i32_0 = arith.constant 0 : i32
    %c0_i32_1 = arith.constant 0 : i32
    return %c0_i32, %c0_i32_0 : i32, i32
  }
  func.func @transform_2(%arg0: i32, %arg1: i32) -> (i32, i32) {
    %c0_i32 = arith.constant 0 : i32
    %c0_i32_0 = arith.constant 0 : i32
    %c0_i32_1 = arith.constant 0 : i32
    return %c0_i32, %c0_i32_0 : i32, i32
  }
  func.func @transform_3(%arg0: i32, %arg1: i32) -> (i32, i32) {
    %c0_i32 = arith.constant 0 : i32
    %c0_i32_0 = arith.constant 0 : i32
    %c0_i32_1 = arith.constant 0 : i32
    return %c0_i32, %c0_i32_0 : i32, i32
  }
  func.func @transform_4(%arg0: i32, %arg1: i32) -> (i32, i32) {
    %c0_i32 = arith.constant 0 : i32
    %c0_i32_0 = arith.constant 0 : i32
    %c0_i32_1 = arith.constant 0 : i32
    return %c0_i32, %c0_i32_0 : i32, i32
  }
  func.func @transform_5(%arg0: i32, %arg1: i32) -> (i32, i32, i32) {
    %c0_i32 = arith.constant 0 : i32
    %c0_i32_0 = arith.constant 0 : i32
    %c0_i32_1 = arith.constant 0 : i32
    return %arg0, %c0_i32, %c0_i32_0 : i32, i32, i32
  }
}

</mosaic_0001>

<bundles_post_ra>
// kernel: tpu_custom_call.1
= control target key start
LH: loop header
LB: loop body
LE: loop exit
PB: predicated region body
PF: predicated region fallthrough
CT: control target
= control target key end

     0   :  { %s1106_s0 = inlined_call_operand.hbm [shape: f32[2,8,32], index: 0, kind: input, shape index: {}]   ;;  %s1107_s1 = inlined_call_operand.hbm [shape: f32[32,32], index: 1, kind: input, shape index: {}]   ;;  %s1108_s2 = inlined_call_operand.vmem [shape: f32[1,32], index: 2, kind: input, shape index: {}]   ;;  %s1109_s3 = inlined_call_operand.hbm [shape: f32[32,128], index: 3, kind: input, shape index: {}]   ;;  %s1110_s4 = inlined_call_operand.vmem [shape: f32[1,128], index: 4, kind: input, shape index: {}]   ;;  %s1111_s5 = inlined_call_operand.hbm [shape: f32[2,1,128], index: 5, kind: output, shape index: {}]  }
   0x1   :  { %1115 = sst [smem:[#allocation13_spill]] %s1107_s1 }
   0x2   :  { %10 = vsyncpa [#allocation4], 0 }
   0x3   :  { %12 = vsyncpa [#allocation4 + $0x1], 0 }
   0x4   :  { %13 = vsyncpa [#allocation7], 0 }
   0x5   :  { %14 = vsyncpa [#allocation5], 0 }
   0x6   :  { %16 = vsyncpa [#allocation5 + $0x1], 0  ;;  %s914_s18 = smov 0   ;;  %s916_s19 = smov 0  }
   0x7   :  { %s918_s20 = smov 0   ;;  %s920_s21 = smov 0  }
   0x8   :  { %s922_s22 = smov 0   ;;  %s924_s23 = smov 0  }
   0x9 LB: > { %s572_s24 = sadd.s32 4294967295, %s874_s23   ;;  %s573_s25 = sadd.s32 4294967294, %s874_s23   ;;  %s874_s23 = sphi %s924_s23, %s22_s23   ;;  %s870_s22 = sphi %s922_s22, %s1133_s22   ;;  %s866_s21 = sphi %s920_s21, %s1132_s21   ;;  %s862_s20 = sphi %s918_s20, %s1131_s20   ;;  %s858_s19 = sphi %s916_s19, %s1130_s19   ;;  %s854_s18 = sphi %s914_s18, %s1129_s18  }
   0xa   : > { %p56_p0 = scmp.ne.s32.totalorder %s858_s19, %s854_s18  ;;  %p948_p1 = scmp.eq.s32.totalorder %s572_s24, 0 }
   0xb   : > { %p952_p2 = scmp.eq.s32.totalorder %s572_s24, 1  ;;  %p170_p3 = scmp.eq.s32.totalorder %s573_s25, 1 }
   0xc   : > { %s1116_s26 = scalar_select %p948_p1, 1, 0 }
   0xd   : > { %p958_p4 = por %p948_p1, %p56_p0  ;;  %p574_p5 = scmp.ge.s32.totalorder %s874_s23, 1 }
   0xe   : > { %p963_p6 = por %p170_p3, %p56_p0  ;;  %p177_p7 = scmp.lt.s32.totalorder %s874_s23, 3 }
   0xf   : > { %s1118_s28 = scalar_select %p958_p4, 1, 0 }
  0x10   : > { %s1119_s29 = scalar_select %p963_p6, 1, 0 }
  0x11   : > { %p968_p8 = pnand %p574_p5, %p177_p7  ;;  %s876_s6 = smov [#allocation6]  }
  0x12   : > { %s189_s7 = sshll.u32 %s876_s6, 4  ;;  %s877_s9 = smov [#allocation8]   ;;  %s190_s7 = int_to_ptr.vmem [resolvable:$true] %s189_s7 }
  0x13   : > { %p633_p9 = pneg %p968_p8  ;;  %s205_s10 = sshll.u32 %s877_s9, 4  ;;  %s206_s10 = int_to_ptr.vmem [resolvable:$true] %s205_s10 }
  0x14   : > { %s721_s11 = scalar_lea.vmem %s190_s7, 512  ;;  %p729_p5 = scmp.lt.s32.totalorder %s190_s7, %s190_s7 }
  0x15   : > { %p977_p11 = pnand %p633_p9, %p948_p1  ;;  %p722_p13 = scmp.ne.s32.totalorder %s190_s7, %s721_s11 }
  0x16   : > { %p730_p7 = scmp.lt.s32.totalorder %s721_s11, %s721_s11 }
  0x17   : > { %p712_p12 = pneg %p977_p11 }
  0x18   : > { %p731_p10 = por %p730_p7, %p729_p5 }
  0x19   : > { %p724_p0 = pnand %p722_p13, %p712_p12 }
  0x1b   : > { %p725_p3 = pneg %p724_p0 }
  0x1d   : > { %p732_p9 = pnand %p731_p10, %p725_p3 }
  0x1f   : > { %735 = shalt.err (!%p732_p9)
}
  0x20   : > { %s878_s12 = smov 128   ;;  %s879_s13 = smov 8  }
  0x21   : > { %s1122_s1 = sld [smem:[#allocation13_spill]]  ;;  %s747_s16 = scalar_lea.vmem %s206_s10, 512 }
  0x22   : > { %p748_p6 = scmp.ne.s32.totalorder %s206_s10, %s747_s16  ;;  %p755_p1 = scmp.lt.s32.totalorder %s206_s10, %s206_s10 }
  0x23   : > { %p756_p4 = scmp.lt.s32.totalorder %s747_s16, %s747_s16 }
  0x24   : > { %p750_p13 = pnand %p748_p6, %p712_p12 }
  0x25   : > { %p757_p5 = por %p756_p4, %p755_p1 }
  0x26   : > { %p751_p0 = pneg %p750_p13 }
  0x27   : > { %636 = dma.hbm_to_vmem [thread:$0]  (!%p977_p11), %s1122_s1, 512, %s190_s7, [#allocation7], %s878_s12, %s878_s12, %s879_s13  }
  0x28   : > { %p758_p10 = pnand %p757_p5, %p751_p0 }
  0x2a   : > { %761 = shalt.err (!%p758_p10)
}
  0x2b   : > { %639 = dma.hbm_to_vmem [thread:$0]  (!%p977_p11), %s1109_s3, 512, %s206_s10, [#allocation7], %s878_s12, %s878_s12, %s879_s13  }
  0x2c   : > { %s34_s25 = sadd.s32 1, %s870_s22  ;;  %s43_s6 = sadd.s32 1, %s862_s20 }
  0x2d   : > { %p36_p1 = scmp.ge.s32.totalorder %s34_s25, 2  ;;  %p50_p4 = scmp.ne.s32.totalorder %s862_s20, %s858_s19 }
  0x2e   : > { %p51_p6 = scmp.eq.s32.totalorder %s874_s23, 0  ;;  %p650_p12 = scmp.lt.s32.totalorder %s874_s23, 2 }
  0x2f   : > { %s1135_s25 = smov (%p36_p1, %s34_s25), 0  ;;  %p1009_p7 = por %p952_p2, %p50_p4 }
  0x30   : > { %p52_p3 = por %p51_p6, %p50_p4  ;;  %s38_s8 = ssub.s32 %s870_s22, %s1135_s25 }
  0x31   : > { %s222_s9 = sand.u32 1, %s862_s20   ;;  %p41_p9 = scmp.eq.s32.totalorder %s38_s8, 0 }
  0x32   : > { %s578_s10 = sshll.u32 %s222_s9, 3  ;;  %s579_s11 = sshll.u32 %s870_s22, 7 }
  0x33   : > { %s1018_s12 = scalar_select %p41_p9, %s862_s20, %s43_s6  }
  0x34   : > { %s232_s15 = scalar_lea.hbm %s1106_s0, %s579_s11  ;;  %s226_s16 = scalar_lea.vmem [#allocation3], %s578_s10 }
  0x35   : > { %s234_s17 = sshll.u32 %s226_s16, 4  ;;  %p1025_p11 = pnand %p650_p12, %p52_p3  ;;  %s235_s17 = int_to_ptr.vmem [resolvable:$true] %s234_s17 }
  0x36   : > { %s223_s24 = scalar_lea.sflag [#allocation4], %s222_s9  ;;  %s775_s8 = scalar_lea.vmem %s235_s17, 128 }
  0x37   : > { %p764_p2 = pneg %p1025_p11  ;;  %p776_p13 = scmp.ne.s32.totalorder %s235_s17, %s775_s8 }
  0x38   : > { %s880_s6 = smov [#allocation3]  }
  0x39   : > { %p778_p0 = pnand %p776_p13, %p764_p2  ;;  %s780_s1 = sshll.u32 %s880_s6, 4  ;;  %s781_s1 = int_to_ptr.vmem [resolvable:$false] %s780_s1 }
  0x3a   : > { %s782_s11 = scalar_lea.vmem %s781_s1, 256  ;;  %p783_p10 = scmp.lt.s32.totalorder %s235_s17, %s781_s1 }
  0x3b   : > { %p779_p5 = pneg %p778_p0  ;;  %p784_p1 = scmp.lt.s32.totalorder %s782_s11, %s775_s8 }
  0x3d   : > { %p785_p4 = por %p784_p1, %p783_p10 }
  0x3f   : > { %p786_p6 = pnand %p785_p4, %p779_p5 }
  0x41   : > { %789 = shalt.err (!%p786_p6)
}
  0x42   : > { %643 = dma.hbm_to_vmem [thread:$0]  (!%p1025_p11), %s232_s15, 128, %s235_s17, %s223_s24  }
  0x43   : > { %243 = sbr.rel (%p968_p8) target bundleno = 521 (0x209), region = 40  ;;  %s1036_s9 = sand.u32 (!%p968_p8), 1, %s858_s19  }
  0x44   : > { %s581_s10 = sshll.u32 (!%p968_p8), %s1036_s9, 3  ;;  %s246_s13 = scalar_lea.sflag (!%p968_p8), [#allocation4], %s1036_s9 }
  0x45   : > { %s249_s14 = scalar_lea.vmem (!%p968_p8), [#allocation3], %s581_s10  ;;  %p1125_p12 = scmp.ne.s32.totalorder (!%p968_p8), %s1118_s28, 0 }
  0x48   : > { %841 = dma.done.wait (%p1125_p12), %s246_s13, 128  }
  0x49   : > { %843 = vsyncadd (%p1125_p12), %s246_s13, 4294967168  ;;  %p1126_p3 = scmp.ne.s32.totalorder %s1116_s26, 0 }
  0x4b   : > { %845 = dma.done.wait (%p1126_p3), [#allocation7], 1024  }
  0x4c   : > { %847 = vsyncadd (%p1126_p3), [#allocation7], 4294966272  ;;  %vm287_vm0 = vcmask 253952   ;;  %v881_v0 = vmov 0.0   ;;  %vm882_vm1 = vmmov 0   ;;  %vm291_vm2 = vcmask 261120  }
  0x4d   : > { %599 = vmatprep.subr.mxu0 %v881_v0  ;;  %607 = vmatprep.mubr.msk.f32.mxu0 %vm882_vm1, %v881_v0  ;;  %288 = vst.msk [vmem:[#allocation2] sm:$0x1] %vm287_vm0, %v881_v0  ;;  %v310_v1 = vld [vmem:[#allocation6 + $0x18] sm:$0xff]  ;;  %v309_v2 = vld [vmem:[#allocation6 + $0x10] sm:$0xff]  ;;  %v308_v4 = vld [vmem:[#allocation6 + $0x8] sm:$0xff]  ;;  %s586_s15 = sshll.u32 %s866_s21, 4 }
  0x4e   : > { %610 = vmatprep.subr.mxu1 %v881_v0  ;;  %618 = vmatprep.mubr.msk.f32.mxu1 %vm882_vm1, %v881_v0  ;;  %v290_v3 = vld [vmem:[%s249_s14] sm:$0xff]  ;;  %v307_v7 = vld [vmem:[#allocation6] sm:$0xff]  ;;  %v387_v19 = vld [vmem:[#allocation8 + $0x8] sm:$0xff]  ;;  %s282_s16 = scalar_lea.vmem [#allocation9], %s1036_s9  ;;  %s1064_s8 = scalar_lea.hbm %s1111_s5, %s586_s15 }
  0x4f   : > { %600 = vmatpush3.msra.mxu0 %v310_v1  ;;  %v292_v5 = vsel %vm291_vm2, %v290_v3, 0.0  ;;  %v389_v17 = vld [vmem:[#allocation8 + $0x18] sm:$0xff]  ;;  %v388_v18 = vld [vmem:[#allocation8 + $0x10] sm:$0xff]  ;;  %v386_v20 = vld [vmem:[#allocation8] sm:$0xff]  ;;  %s478_s17 = sshll.u32 %s282_s16, 4  ;;  %s466_s6 = scalar_lea.sflag [#allocation5], %s1036_s9  ;;  %s479_s17 = int_to_ptr.vmem [resolvable:$true] %s478_s17 }
  0x50   : > { %601 = vmatprep.subr.mxu0 %v881_v0  ;;  %v293_v6 = vrot.slane %v292_v5, 4  ;;  %611 = vmatpush3.msra.mxu1 %v389_v17  ;;  %v311_v21 = vld [vmem:[%s1108_s2] sm:$0x1]  ;;  %s790_s11 = scalar_lea.vmem %s479_s17, 16  ;;  %s883_s10 = smov [#allocation9]  }
  0x51   : > { %602 = vmatpush3.msra.mxu0 %v309_v2  ;;  %612 = vmatprep.subr.mxu1 %v881_v0  ;;  %v390_v26 = vld [vmem:[%s1110_s4] sm:$0x1]  ;;  %p791_p8 = scmp.ne.s32.totalorder %s479_s17, %s790_s11  ;;  %s794_s21 = sshll.u32 %s883_s10, 4  ;;  %s795_s21 = int_to_ptr.vmem [resolvable:$false] %s794_s21 }
  0x52   : > { %603 = vmatprep.subr.mxu0 %v881_v0  ;;  %v294_v8 = vadd.f32 %v293_v6, %v292_v5  ;;  %613 = vmatpush3.msra.mxu1 %v388_v18  ;;  %s796_s13 = scalar_lea.vmem %s795_s21, 32  ;;  %p797_p2 = scmp.lt.s32.totalorder %s479_s17, %s795_s21 }
  0x53   : > { %604 = vmatpush3.msra.mxu0 %v308_v4  ;;  %614 = vmatprep.subr.mxu1 %v881_v0  ;;  %p792_p9 = pnand %p791_p8, %p1009_p7  ;;  %p798_p13 = scmp.lt.s32.totalorder %s796_s13, %s790_s11 }
  0x54   : > { %605 = vmatprep.subr.mxu0 %v881_v0  ;;  %v295_v9 = vrot.slane %v294_v8, 2  ;;  %v289_v12 = vld [vmem:[#allocation2] sm:$0x1]  ;;  %615 = vmatpush3.msra.mxu1 %v387_v19 }
  0x55   : > { %606 = vmatpush3.msra.mxu0 %v307_v7  ;;  %616 = vmatprep.subr.mxu1 %v881_v0  ;;  %p793_p11 = pneg %p792_p9  ;;  %p799_p0 = por %p798_p13, %p797_p2 }
  0x56   : > { %v296_v10 = vadd.f32 %v295_v9, %v294_v8  ;;  %617 = vmatpush3.msra.mxu1 %v386_v20 }
  0x57   : > { %p800_p5 = pnand %p799_p0, %p793_p11 }
  0x58   : > { %v297_v11 = vrot.slane %v296_v10, 1 }
  0x5a   : > { %v298_v13 = vadd.f32 %v297_v11, %v296_v10 }
  0x5c   : > { %v299_v14 = vadd.f32 %v298_v13, %v289_v12 }
  0x5e   : > { %301 = vst.msk [vmem:[#allocation2] sm:$0x1] %vm287_vm0, %v299_v14 }
  0x65   : > { %v305_v15 = vld [vmem:[#allocation2] sm:$0x1] }
  0x66   : > { %v306_v16 = vmul.f32 0.125, %v305_v15 }
  0x68   : > { %608 = vmatmul.mubr.msk.f32.vlgmr.msra.gmra.mxu0 %vm291_vm2, %v306_v16 }
 0x128   : > { %v381_v22 = vpop.f32.mrf.mxu0 }
 0x129   : > { %v382_v23 = vadd.f32 %v381_v22, %v311_v21 }
 0x12a   : > { %v609_v24 = vpop.f32.mrf.mxu0 }
 0x12b   : > { %708 = vtanh.f32 %v382_v23 }
 0x138   : > { %v709_v25 = vpop.eup %708 }
 0x139   : > { %619 = vmatmul.mubr.msk.f32.vlgmr.msra.gmra.mxu1 %vm291_vm2, %v709_v25 }
 0x1f9   : > { %v460_v27 = vpop.f32.mrf.mxu1 }
 0x1fa   : > { %v461_v28 = vadd.f32 %v460_v27, %v390_v26 }
 0x1fb   : > { %v620_v29 = vpop.f32.mrf.mxu1 }
 0x1fc   : > { %464 = vst [vmem:[%s282_s16] sm:$0x1] %v461_v28 }
 0x1fd   : > { %803 = shalt.err (!%p800_p5)
}
 0x1fe   : > { %s804_s14 = scalar_lea.hbm %s1064_s8, 16  ;;  %s808_s26 = scalar_lea.hbm %s1111_s5, 32 }
 0x1ff   : > { %p805_p10 = scmp.ne.s32.totalorder %s1064_s8, %s804_s14  ;;  %p809_p6 = scmp.lt.s32.totalorder %s1064_s8, %s1111_s5 }
 0x200   : > { %p810_p12 = scmp.lt.s32.totalorder %s808_s26, %s804_s14 }
 0x201   : > { %p806_p1 = pnand %p805_p10, %p1009_p7 }
 0x202   : > { %p811_p3 = por %p810_p12, %p809_p6 }
 0x203   : > { %p807_p4 = pneg %p806_p1 }
 0x205   : > { %p812_p8 = pnand %p811_p3, %p807_p4 }
 0x207   : > { %815 = shalt.err (!%p812_p8)
}
 0x208   : > { %631 = dma.vmem_to_hbm [thread:$0]  (%p1009_p7), %s479_s17, 16, %s1064_s8, %s466_s6  }
 0x209 PF: > { %s490_s15 = sand.u32 1, %s854_s18   ;;  %p1127_p9 = scmp.ne.s32.totalorder %s1119_s29, 0 }
 0x20a   : > { %p1128_p11 = scmp.ge.s32.totalorder %s874_s23, 2  ;;  %s491_s16 = scalar_lea.sflag [#allocation5], %s490_s15 }
 0x20c   : > { %p645_p2 = pnand %p1128_p11, %p1127_p9 }
 0x20e   : > { %p646_p13 = pneg %p645_p2 }
 0x210   : > { %849 = dma.done.wait (%p646_p13), %s491_s16, 16  }
 0x211   : > { %851 = vsyncadd (%p646_p13), %s491_s16, 4294967280  ;;  %s22_s23 = sadd.s32 1, %s874_s23   ;;  %s1129_s18 = smov %s858_s19 }
 0x212   : > { %p19_p0 = scmp.ge.s32.totalorder %s22_s23, 4   ;;  %s1130_s19 = smov %s862_s20 }
 0x213   : > { %s1131_s20 = smov %s1018_s12  ;;  %s1132_s21 = smov %s870_s22 }
 0x214   : > { %s1133_s22 = smov %s1135_s25  ;;  %21 = sbr.rel (!%p19_p0) target bundleno = 9 (0x9), region = 101 }
 0x219   :  { %495 = vsyncpa [#allocation4], 1 }
 0x21a   :  { %497 = vsyncpa [#allocation4 + $0x1], 1 }
 0x21b   :  { %498 = vsyncpa [#allocation7], 1 }
 0x21c   :  { %499 = vsyncpa [#allocation5], 1 }
 0x21d   :  { %501 = vsyncpa [#allocation5 + $0x1], 1 }

// kernel: tpu_custom_call.1
= control target key start
LH: loop header
LB: loop body
LE: loop exit
PB: predicated region body
PF: predicated region fallthrough
CT: control target
= control target key end

     0   :  { %s1106_s0 = inlined_call_operand.hbm [shape: f32[2,8,32], index: 0, kind: input, shape index: {}]   ;;  %s1107_s1 = inlined_call_operand.hbm [shape: f32[32,32], index: 1, kind: input, shape index: {}]   ;;  %s1108_s2 = inlined_call_operand.vmem [shape: f32[1,32], index: 2, kind: input, shape index: {}]   ;;  %s1109_s3 = inlined_call_operand.hbm [shape: f32[32,128], index: 3, kind: input, shape index: {}]   ;;  %s1110_s4 = inlined_call_operand.vmem [shape: f32[1,128], index: 4, kind: input, shape index: {}]   ;;  %s1111_s5 = inlined_call_operand.hbm [shape: f32[2,1,128], index: 5, kind: output, shape index: {}]  }
   0x1   :  { %1115 = sst [smem:[#allocation13_spill]] %s1107_s1 }
   0x2   :  { %10 = vsyncpa [#allocation4], 0 }
   0x3   :  { %12 = vsyncpa [#allocation4 + $0x1], 0 }
   0x4   :  { %13 = vsyncpa [#allocation7], 0 }
   0x5   :  { %14 = vsyncpa [#allocation5], 0 }
   0x6   :  { %16 = vsyncpa [#allocation5 + $0x1], 0  ;;  %s914_s18 = smov 0   ;;  %s916_s19 = smov 0  }
   0x7   :  { %s918_s20 = smov 0   ;;  %s920_s21 = smov 0  }
   0x8   :  { %s922_s22 = smov 0   ;;  %s924_s23 = smov 0  }
   0x9 LB: > { %s572_s24 = sadd.s32 4294967295, %s874_s23   ;;  %s573_s25 = sadd.s32 4294967294, %s874_s23   ;;  %s874_s23 = sphi %s924_s23, %s22_s23   ;;  %s870_s22 = sphi %s922_s22, %s1133_s22   ;;  %s866_s21 = sphi %s920_s21, %s1132_s21   ;;  %s862_s20 = sphi %s918_s20, %s1131_s20   ;;  %s858_s19 = sphi %s916_s19, %s1130_s19   ;;  %s854_s18 = sphi %s914_s18, %s1129_s18  }
   0xa   : > { %p56_p0 = scmp.ne.s32.totalorder %s858_s19, %s854_s18  ;;  %p948_p1 = scmp.eq.s32.totalorder %s572_s24, 0 }
   0xb   : > { %p952_p2 = scmp.eq.s32.totalorder %s572_s24, 1  ;;  %p170_p3 = scmp.eq.s32.totalorder %s573_s25, 1 }
   0xc   : > { %s1116_s26 = scalar_select %p948_p1, 1, 0 }
   0xd   : > { %p958_p4 = por %p948_p1, %p56_p0  ;;  %p574_p5 = scmp.ge.s32.totalorder %s874_s23, 1 }
   0xe   : > { %p963_p6 = por %p170_p3, %p56_p0  ;;  %p177_p7 = scmp.lt.s32.totalorder %s874_s23, 3 }
   0xf   : > { %s1118_s28 = scalar_select %p958_p4, 1, 0 }
  0x10   : > { %s1119_s29 = scalar_select %p963_p6, 1, 0 }
  0x11   : > { %p968_p8 = pnand %p574_p5, %p177_p7  ;;  %s876_s6 = smov [#allocation6]  }
  0x12   : > { %s189_s7 = sshll.u32 %s876_s6, 4  ;;  %s877_s9 = smov [#allocation8]   ;;  %s190_s7 = int_to_ptr.vmem [resolvable:$true] %s189_s7 }
  0x13   : > { %p633_p9 = pneg %p968_p8  ;;  %s205_s10 = sshll.u32 %s877_s9, 4  ;;  %s206_s10 = int_to_ptr.vmem [resolvable:$true] %s205_s10 }
  0x14   : > { %s721_s11 = scalar_lea.vmem %s190_s7, 512  ;;  %p729_p5 = scmp.lt.s32.totalorder %s190_s7, %s190_s7 }
  0x15   : > { %p977_p11 = pnand %p633_p9, %p948_p1  ;;  %p722_p13 = scmp.ne.s32.totalorder %s190_s7, %s721_s11 }
  0x16   : > { %p730_p7 = scmp.lt.s32.totalorder %s721_s11, %s721_s11 }
  0x17   : > { %p712_p12 = pneg %p977_p11 }
  0x18   : > { %p731_p10 = por %p730_p7, %p729_p5 }
  0x19   : > { %p724_p0 = pnand %p722_p13, %p712_p12 }
  0x1b   : > { %p725_p3 = pneg %p724_p0 }
  0x1d   : > { %p732_p9 = pnand %p731_p10, %p725_p3 }
  0x1f   : > { %735 = shalt.err (!%p732_p9)
}
  0x20   : > { %s878_s12 = smov 128   ;;  %s879_s13 = smov 8  }
  0x21   : > { %s1122_s1 = sld [smem:[#allocation13_spill]]  ;;  %s747_s16 = scalar_lea.vmem %s206_s10, 512 }
  0x22   : > { %p748_p6 = scmp.ne.s32.totalorder %s206_s10, %s747_s16  ;;  %p755_p1 = scmp.lt.s32.totalorder %s206_s10, %s206_s10 }
  0x23   : > { %p756_p4 = scmp.lt.s32.totalorder %s747_s16, %s747_s16 }
  0x24   : > { %p750_p13 = pnand %p748_p6, %p712_p12 }
  0x25   : > { %p757_p5 = por %p756_p4, %p755_p1 }
  0x26   : > { %p751_p0 = pneg %p750_p13 }
  0x27   : > { %636 = dma.hbm_to_vmem [thread:$0]  (!%p977_p11), %s1122_s1, 512, %s190_s7, [#allocation7], %s878_s12, %s878_s12, %s879_s13  }
  0x28   : > { %p758_p10 = pnand %p757_p5, %p751_p0 }
  0x2a   : > { %761 = shalt.err (!%p758_p10)
}
  0x2b   : > { %639 = dma.hbm_to_vmem [thread:$0]  (!%p977_p11), %s1109_s3, 512, %s206_s10, [#allocation7], %s878_s12, %s878_s12, %s879_s13  }
  0x2c   : > { %s34_s25 = sadd.s32 1, %s870_s22  ;;  %s43_s6 = sadd.s32 1, %s862_s20 }
  0x2d   : > { %p36_p1 = scmp.ge.s32.totalorder %s34_s25, 2  ;;  %p50_p4 = scmp.ne.s32.totalorder %s862_s20, %s858_s19 }
  0x2e   : > { %p51_p6 = scmp.eq.s32.totalorder %s874_s23, 0  ;;  %p650_p12 = scmp.lt.s32.totalorder %s874_s23, 2 }
  0x2f   : > { %s1135_s25 = smov (%p36_p1, %s34_s25), 0  ;;  %p1009_p7 = por %p952_p2, %p50_p4 }
  0x30   : > { %p52_p3 = por %p51_p6, %p50_p4  ;;  %s38_s8 = ssub.s32 %s870_s22, %s1135_s25 }
  0x31   : > { %s222_s9 = sand.u32 1, %s862_s20   ;;  %p41_p9 = scmp.eq.s32.totalorder %s38_s8, 0 }
  0x32   : > { %s578_s10 = sshll.u32 %s222_s9, 3  ;;  %s579_s11 = sshll.u32 %s870_s22, 7 }
  0x33   : > { %s1018_s12 = scalar_select %p41_p9, %s862_s20, %s43_s6  }
  0x34   : > { %s232_s15 = scalar_lea.hbm %s1106_s0, %s579_s11  ;;  %s226_s16 = scalar_lea.vmem [#allocation3], %s578_s10 }
  0x35   : > { %s234_s17 = sshll.u32 %s226_s16, 4  ;;  %p1025_p11 = pnand %p650_p12, %p52_p3  ;;  %s235_s17 = int_to_ptr.vmem [resolvable:$true] %s234_s17 }
  0x36   : > { %s223_s24 = scalar_lea.sflag [#allocation4], %s222_s9  ;;  %s775_s8 = scalar_lea.vmem %s235_s17, 128 }
  0x37   : > { %p764_p2 = pneg %p1025_p11  ;;  %p776_p13 = scmp.ne.s32.totalorder %s235_s17, %s775_s8 }
  0x38   : > { %s880_s6 = smov [#allocation3]  }
  0x39   : > { %p778_p0 = pnand %p776_p13, %p764_p2  ;;  %s780_s1 = sshll.u32 %s880_s6, 4  ;;  %s781_s1 = int_to_ptr.vmem [resolvable:$false] %s780_s1 }
  0x3a   : > { %s782_s11 = scalar_lea.vmem %s781_s1, 256  ;;  %p783_p10 = scmp.lt.s32.totalorder %s235_s17, %s781_s1 }
  0x3b   : > { %p779_p5 = pneg %p778_p0  ;;  %p784_p1 = scmp.lt.s32.totalorder %s782_s11, %s775_s8 }
  0x3d   : > { %p785_p4 = por %p784_p1, %p783_p10 }
  0x3f   : > { %p786_p6 = pnand %p785_p4, %p779_p5 }
  0x41   : > { %789 = shalt.err (!%p786_p6)
}
  0x42   : > { %643 = dma.hbm_to_vmem [thread:$0]  (!%p1025_p11), %s232_s15, 128, %s235_s17, %s223_s24  }
  0x43   : > { %243 = sbr.rel (%p968_p8) target bundleno = 521 (0x209), region = 40  ;;  %s1036_s9 = sand.u32 (!%p968_p8), 1, %s858_s19  }
  0x44   : > { %s581_s10 = sshll.u32 (!%p968_p8), %s1036_s9, 3  ;;  %s246_s13 = scalar_lea.sflag (!%p968_p8), [#allocation4], %s1036_s9 }
  0x45   : > { %s249_s14 = scalar_lea.vmem (!%p968_p8), [#allocation3], %s581_s10  ;;  %p1125_p12 = scmp.ne.s32.totalorder (!%p968_p8), %s1118_s28, 0 }
  0x48   : > { %841 = dma.done.wait (%p1125_p12), %s246_s13, 128  }
  0x49   : > { %843 = vsyncadd (%p1125_p12), %s246_s13, 4294967168  ;;  %p1126_p3 = scmp.ne.s32.totalorder %s1116_s26, 0 }
  0x4b   : > { %845 = dma.done.wait (%p1126_p3), [#allocation7], 1024  }
  0x4c   : > { %847 = vsyncadd (%p1126_p3), [#allocation7], 4294966272  ;;  %vm287_vm0 = vcmask 253952   ;;  %v881_v0 = vmov 0.0   ;;  %vm882_vm1 = vmmov 0   ;;  %vm291_vm2 = vcmask 261120  }
  0x4d   : > { %599 = vmatprep.subr.mxu0 %v881_v0  ;;  %607 = vmatprep.mubr.msk.f32.mxu0 %vm882_vm1, %v881_v0  ;;  %288 = vst.msk [vmem:[#allocation2] sm:$0x1] %vm287_vm0, %v881_v0  ;;  %v310_v1 = vld [vmem:[#allocation6 + $0x18] sm:$0xff]  ;;  %v309_v2 = vld [vmem:[#allocation6 + $0x10] sm:$0xff]  ;;  %v308_v4 = vld [vmem:[#allocation6 + $0x8] sm:$0xff]  ;;  %s586_s15 = sshll.u32 %s866_s21, 4 }
  0x4e   : > { %610 = vmatprep.subr.mxu1 %v881_v0  ;;  %618 = vmatprep.mubr.msk.f32.mxu1 %vm882_vm1, %v881_v0  ;;  %v290_v3 = vld [vmem:[%s249_s14] sm:$0xff]  ;;  %v307_v7 = vld [vmem:[#allocation6] sm:$0xff]  ;;  %v387_v19 = vld [vmem:[#allocation8 + $0x8] sm:$0xff]  ;;  %s282_s16 = scalar_lea.vmem [#allocation9], %s1036_s9  ;;  %s1064_s8 = scalar_lea.hbm %s1111_s5, %s586_s15 }
  0x4f   : > { %600 = vmatpush3.msra.mxu0 %v310_v1  ;;  %v292_v5 = vsel %vm291_vm2, %v290_v3, 0.0  ;;  %v389_v17 = vld [vmem:[#allocation8 + $0x18] sm:$0xff]  ;;  %v388_v18 = vld [vmem:[#allocation8 + $0x10] sm:$0xff]  ;;  %v386_v20 = vld [vmem:[#allocation8] sm:$0xff]  ;;  %s478_s17 = sshll.u32 %s282_s16, 4  ;;  %s466_s6 = scalar_lea.sflag [#allocation5], %s1036_s9  ;;  %s479_s17 = int_to_ptr.vmem [resolvable:$true] %s478_s17 }
  0x50   : > { %601 = vmatprep.subr.mxu0 %v881_v0  ;;  %v293_v6 = vrot.slane %v292_v5, 4  ;;  %611 = vmatpush3.msra.mxu1 %v389_v17  ;;  %v311_v21 = vld [vmem:[%s1108_s2] sm:$0x1]  ;;  %s790_s11 = scalar_lea.vmem %s479_s17, 16  ;;  %s883_s10 = smov [#allocation9]  }
  0x51   : > { %602 = vmatpush3.msra.mxu0 %v309_v2  ;;  %612 = vmatprep.subr.mxu1 %v881_v0  ;;  %v390_v26 = vld [vmem:[%s1110_s4] sm:$0x1]  ;;  %p791_p8 = scmp.ne.s32.totalorder %s479_s17, %s790_s11  ;;  %s794_s21 = sshll.u32 %s883_s10, 4  ;;  %s795_s21 = int_to_ptr.vmem [resolvable:$false] %s794_s21 }
  0x52   : > { %603 = vmatprep.subr.mxu0 %v881_v0  ;;  %v294_v8 = vadd.f32 %v293_v6, %v292_v5  ;;  %613 = vmatpush3.msra.mxu1 %v388_v18  ;;  %s796_s13 = scalar_lea.vmem %s795_s21, 32  ;;  %p797_p2 = scmp.lt.s32.totalorder %s479_s17, %s795_s21 }
  0x53   : > { %604 = vmatpush3.msra.mxu0 %v308_v4  ;;  %614 = vmatprep.subr.mxu1 %v881_v0  ;;  %p792_p9 = pnand %p791_p8, %p1009_p7  ;;  %p798_p13 = scmp.lt.s32.totalorder %s796_s13, %s790_s11 }
  0x54   : > { %605 = vmatprep.subr.mxu0 %v881_v0  ;;  %v295_v9 = vrot.slane %v294_v8, 2  ;;  %v289_v12 = vld [vmem:[#allocation2] sm:$0x1]  ;;  %615 = vmatpush3.msra.mxu1 %v387_v19 }
  0x55   : > { %606 = vmatpush3.msra.mxu0 %v307_v7  ;;  %616 = vmatprep.subr.mxu1 %v881_v0  ;;  %p793_p11 = pneg %p792_p9  ;;  %p799_p0 = por %p798_p13, %p797_p2 }
  0x56   : > { %v296_v10 = vadd.f32 %v295_v9, %v294_v8  ;;  %617 = vmatpush3.msra.mxu1 %v386_v20 }
  0x57   : > { %p800_p5 = pnand %p799_p0, %p793_p11 }
  0x58   : > { %v297_v11 = vrot.slane %v296_v10, 1 }
  0x5a   : > { %v298_v13 = vadd.f32 %v297_v11, %v296_v10 }
  0x5c   : > { %v299_v14 = vadd.f32 %v298_v13, %v289_v12 }
  0x5e   : > { %301 = vst.msk [vmem:[#allocation2] sm:$0x1] %vm287_vm0, %v299_v14 }
  0x65   : > { %v305_v15 = vld [vmem:[#allocation2] sm:$0x1] }
  0x66   : > { %v306_v16 = vmul.f32 0.125, %v305_v15 }
  0x68   : > { %608 = vmatmul.mubr.msk.f32.vlgmr.msra.gmra.mxu0 %vm291_vm2, %v306_v16 }
 0x128   : > { %v381_v22 = vpop.f32.mrf.mxu0 }
 0x129   : > { %v382_v23 = vadd.f32 %v381_v22, %v311_v21 }
 0x12a   : > { %v609_v24 = vpop.f32.mrf.mxu0 }
 0x12b   : > { %708 = vtanh.f32 %v382_v23 }
 0x138   : > { %v709_v25 = vpop.eup %708 }
 0x139   : > { %619 = vmatmul.mubr.msk.f32.vlgmr.msra.gmra.mxu1 %vm291_vm2, %v709_v25 }
 0x1f9   : > { %v460_v27 = vpop.f32.mrf.mxu1 }
 0x1fa   : > { %v461_v28 = vadd.f32 %v460_v27, %v390_v26 }
 0x1fb   : > { %v620_v29 = vpop.f32.mrf.mxu1 }
 0x1fc   : > { %464 = vst [vmem:[%s282_s16] sm:$0x1] %v461_v28 }
 0x1fd   : > { %803 = shalt.err (!%p800_p5)
}
 0x1fe   : > { %s804_s14 = scalar_lea.hbm %s1064_s8, 16  ;;  %s808_s26 = scalar_lea.hbm %s1111_s5, 32 }
 0x1ff   : > { %p805_p10 = scmp.ne.s32.totalorder %s1064_s8, %s804_s14  ;;  %p809_p6 = scmp.lt.s32.totalorder %s1064_s8, %s1111_s5 }
 0x200   : > { %p810_p12 = scmp.lt.s32.totalorder %s808_s26, %s804_s14 }
 0x201   : > { %p806_p1 = pnand %p805_p10, %p1009_p7 }
 0x202   : > { %p811_p3 = por %p810_p12, %p809_p6 }
 0x203   : > { %p807_p4 = pneg %p806_p1 }
 0x205   : > { %p812_p8 = pnand %p811_p3, %p807_p4 }
 0x207   : > { %815 = shalt.err (!%p812_p8)
}
 0x208   : > { %631 = dma.vmem_to_hbm [thread:$0]  (%p1009_p7), %s479_s17, 16, %s1064_s8, %s466_s6  }
 0x209 PF: > { %s490_s15 = sand.u32 1, %s854_s18   ;;  %p1127_p9 = scmp.ne.s32.totalorder %s1119_s29, 0 }
 0x20a   : > { %p1128_p11 = scmp.ge.s32.totalorder %s874_s23, 2  ;;  %s491_s16 = scalar_lea.sflag [#allocation5], %s490_s15 }
 0x20c   : > { %p645_p2 = pnand %p1128_p11, %p1127_p9 }
 0x20e   : > { %p646_p13 = pneg %p645_p2 }
 0x210   : > { %849 = dma.done.wait (%p646_p13), %s491_s16, 16  }
 0x211   : > { %851 = vsyncadd (%p646_p13), %s491_s16, 4294967280  ;;  %s22_s23 = sadd.s32 1, %s874_s23   ;;  %s1129_s18 = smov %s858_s19 }
 0x212   : > { %p19_p0 = scmp.ge.s32.totalorder %s22_s23, 4   ;;  %s1130_s19 = smov %s862_s20 }
 0x213   : > { %s1131_s20 = smov %s1018_s12  ;;  %s1132_s21 = smov %s870_s22 }
 0x214   : > { %s1133_s22 = smov %s1135_s25  ;;  %21 = sbr.rel (!%p19_p0) target bundleno = 9 (0x9), region = 101 }
 0x219   :  { %495 = vsyncpa [#allocation4], 1 }
 0x21a   :  { %497 = vsyncpa [#allocation4 + $0x1], 1 }
 0x21b   :  { %498 = vsyncpa [#allocation7], 1 }
 0x21c   :  { %499 = vsyncpa [#allocation5], 1 }
 0x21d   :  { %501 = vsyncpa [#allocation5 + $0x1], 1 }

</bundles_post_ra>
